<compile_context>
chip_gen: v7x
topology: tpu7x:2x2x1
jax: 0.10.0
libtpu: 0.0.40
codegen_flags: <defaults>
</compile_context>

<pallas_src>
import functools
from typing import NamedTuple

import jax
import jax.numpy as jnp
from jax.experimental import pallas as pl
from jax.experimental.pallas import tpu as pltpu


def _round_up(n, m):
    return ((n + m - 1) // m) * m


def _cdiv(a, b):
    return (a + b - 1) // b


def _default_vmem_limit_bytes():
    # ~75% of physical VMEM: v5e/v6e -> 96 MiB, v7x -> 48 MiB. Fallback is
    # safe on every generation and well above the default scoped limits.
    try:
        cap = getattr(pltpu.get_tpu_info(), "vmem_capacity_bytes", None)
        if cap:
            return int(cap) * 3 // 4
    except Exception:
        pass
    return 48 * 1024 * 1024


class FFNPlan(NamedTuple):
    d_model: int
    d_ff: int
    d_model_p: int        # padded d_model (= grid_j * tn)
    d_ff_p: int           # padded d_ff   (= grid_k * tk)
    tn: int               # output-feature tile (W2 columns / out columns)
    tk: int               # d_ff reduction tile
    grid_j: int
    grid_k: int
    compute_dtype: object
    vmem_limit_bytes: int


def plan_ffn(d_model, d_ff, *, compute_dtype=jnp.bfloat16,
             vmem_limit_bytes=None, tn_max=1024):
    """Shape-only planning (independent of the row count M)."""
    if vmem_limit_bytes is None:
        vmem_limit_bytes = _default_vmem_limit_bytes()
    itemsize = jnp.dtype(compute_dtype).itemsize

    # Lane-dense output-feature tiling (j axis only engages for huge d_model).
    d_model_p0 = _round_up(d_model, 128)
    if d_model_p0 <= tn_max:
        grid_j, tn, d_model_p = 1, d_model_p0, d_model_p0
    else:
        grid_j = _cdiv(d_model_p0, tn_max)
        tn = _round_up(_cdiv(d_model_p0, grid_j), 128)
        d_model_p = tn * grid_j

    d_ff_p0 = _round_up(d_ff, 128)

    # Weight-resident fast path: both full packed weights (x2 for Pallas'
    # double buffering) must fit in <45% of the VMEM budget.
    resident_bytes = 2 * 2 * d_model_p * d_ff_p0 * itemsize
    if resident_bytes <= 0.45 * vmem_limit_bytes:
        tk, grid_k, d_ff_p = d_ff_p0, 1, d_ff_p0
    else:
        tk = 256 if d_model_p >= 2048 else 512    # cap weight-block footprint
        tk = min(tk, d_ff_p0)
        grid_k = _cdiv(d_ff_p0, tk)
        d_ff_p = tk * grid_k

    return FFNPlan(d_model, d_ff, d_model_p, d_ff_p, tn, tk, grid_j, grid_k,
                   compute_dtype, vmem_limit_bytes)


def pack_ffn_params(plan, w1, b1, w2, b2):
    """One-time weight repacking; call once and reuse across forward calls.

    PyTorch nn.Linear layout: w1 (d_ff, d_model), b1 (d_ff,),
                              w2 (d_model, d_ff), b2 (d_model,).
    Returns (w1_t, b1_r, w2_t, b2_r): (in, out)-layout, zero-padded, weights
    in compute dtype, biases kept in f32 (added on the f32 accumulate path).
    """
    cd = plan.compute_dtype
    w1_t = jnp.pad(jnp.asarray(w1).T.astype(cd),
                   ((0, plan.d_model_p - plan.d_model),
                    (0, plan.d_ff_p - plan.d_ff)))
    w2_t = jnp.pad(jnp.asarray(w2).T.astype(cd),
                   ((0, plan.d_ff_p - plan.d_ff),
                    (0, plan.d_model_p - plan.d_model)))
    b1_r = jnp.pad(jnp.asarray(b1).astype(jnp.float32),
                   (0, plan.d_ff_p - plan.d_ff)).reshape(1, plan.d_ff_p)
    b2_r = jnp.pad(jnp.asarray(b2).astype(jnp.float32),
                   (0, plan.d_model_p - plan.d_model)).reshape(1, plan.d_model_p)
    return w1_t, b1_r, w2_t, b2_r


def _ffn_kernel_resident(x_ref, w1_ref, b1_ref, w2_ref, b2_ref, o_ref):
    # Whole d_ff resident (grid_k == 1): one fused pass, no scratch.
    h = jnp.dot(x_ref[...], w1_ref[...], preferred_element_type=jnp.float32)
    h = jnp.maximum(h + b1_ref[...], 0.0)
    # dropout: identity (eval mode / dropout=0.0 as in TransformerAE).
    y = jnp.dot(h.astype(w2_ref.dtype), w2_ref[...],
                preferred_element_type=jnp.float32)
    o_ref[...] = (y + b2_ref[...]).astype(o_ref.dtype)


def _ffn_kernel_stream(x_ref, w1_ref, b1_ref, w2_ref, b2_ref, o_ref):
    # d_ff streamed along the last ("arbitrary") grid axis; the f32 output
    # block is resident across it and serves directly as the accumulator.
    k = pl.program_id(2)

    @pl.when(k == 0)
    def _():
        o_ref[...] = jnp.broadcast_to(b2_ref[...], o_ref.shape)

    h = jnp.dot(x_ref[...], w1_ref[...], preferred_element_type=jnp.float32)
    h = jnp.maximum(h + b1_ref[...], 0.0)
    # dropout: identity in eval mode.
    # TODO(synk): training-mode dropout would need pltpu.prng_seed +
    #             pltpu.prng_random_bits keep-mask scaled by 1/(1-p).
    o_ref[...] += jnp.dot(h.astype(w2_ref.dtype), w2_ref[...],
                          preferred_element_type=jnp.float32)


def feed_forward_packed(plan, x, w1_t, b1_r, w2_t, b2_r):
    """Eval-mode FeedForward on pre-packed params. x: (..., d_model)."""
    orig_shape = x.shape
    out_dtype = x.dtype
    d_model = plan.d_model
    x2d = x.reshape(-1, d_model)
    M = x2d.shape[0]

    itemsize_in = jnp.dtype(plan.compute_dtype).itemsize
    stream = plan.grid_k > 1
    kernel_out_dtype = jnp.float32 if stream else out_dtype
    itemsize_out = jnp.dtype(kernel_out_dtype).itemsize

    # ---- row tile ----------------------------------------------------------
    M_16 = _round_up(max(M, 1), 16)                 # bf16 sublane packing
    tm = _round_up(min(512 if stream else 256, M_16), 16)
    # Megacore: ensure >= 2 row programs when rows allow and there is no
    # other parallel axis.
    if plan.grid_j == 1 and 32 <= M_16 < 2 * tm:
        tm = _round_up(_cdiv(M_16, 2), 16)

    def _footprint(tm_):                            # double-buffered blocks
        x_b = tm_ * plan.d_model_p * itemsize_in
        w1_b = plan.d_model_p * plan.tk * itemsize_in
        w2_b = plan.tk * plan.tn * itemsize_in
        b_b = (plan.tk + plan.tn) * 4
        o_b = tm_ * plan.tn * itemsize_out
        return 2 * (x_b + w1_b + w2_b + b_b + o_b)

    while tm > 16 and _footprint(tm) > 0.8 * plan.vmem_limit_bytes:
        tm = max(16, _round_up(tm // 2, 16))

    M_p = _round_up(M, tm)
    grid_m = M_p // tm

    # ---- activation padding (lane/sublane dense, no zeros+scatter) ---------
    x2d = x2d.astype(plan.compute_dtype)
    if M_p != M or plan.d_model_p != d_model:
        x2d = jnp.pad(x2d, ((0, M_p - M), (0, plan.d_model_p - d_model)))

    grid = (grid_m, plan.grid_j, plan.grid_k)
    kernel = _ffn_kernel_stream if stream else _ffn_kernel_resident

    flops = 4 * M_p * plan.d_model_p * plan.d_ff_p
    bytes_accessed = (M_p * plan.d_model_p * itemsize_in
                      + 2 * plan.d_model_p * plan.d_ff_p * itemsize_in
                      + M_p * plan.d_model_p * itemsize_out)

    out2d = pl.pallas_call(
        kernel,
        out_shape=jax.ShapeDtypeStruct((M_p, plan.d_model_p), kernel_out_dtype),
        grid_spec=pltpu.PrefetchScalarGridSpec(
            num_scalar_prefetch=0,
            grid=grid,
            in_specs=[
                pl.BlockSpec((tm, plan.d_model_p), lambda i, j, k: (i, 0)),   # x
                pl.BlockSpec((plan.d_model_p, plan.tk), lambda i, j, k: (0, k)),  # W1^T
                pl.BlockSpec((1, plan.tk), lambda i, j, k: (0, k)),           # b1
                pl.BlockSpec((plan.tk, plan.tn), lambda i, j, k: (k, j)),     # W2^T
                pl.BlockSpec((1, plan.tn), lambda i, j, k: (0, j)),           # b2
            ],
            out_specs=pl.BlockSpec((tm, plan.tn), lambda i, j, k: (i, j)),
        ),
        compiler_params=pltpu.CompilerParams(
            dimension_semantics=("parallel", "parallel", "arbitrary"),
            vmem_limit_bytes=plan.vmem_limit_bytes),
        cost_estimate=pl.CostEstimate(flops=flops, transcendentals=0,
                                      bytes_accessed=bytes_accessed),
    )(x2d, w1_t, b1_r, w2_t, b2_r)

    out2d = out2d[:M, :d_model]
    if out2d.dtype != out_dtype:
        out2d = out2d.astype(out_dtype)
    return out2d.reshape(orig_shape)


def feed_forward(x, w1, b1, w2, b2, **plan_kwargs):
    """Convenience one-shot wrapper (packs weights per call; for repeated use
    call plan_ffn/pack_ffn_params once and reuse feed_forward_packed)."""
    plan = plan_ffn(x.shape[-1], w1.shape[0], **plan_kwargs)
    packed = pack_ffn_params(plan, w1, b1, w2, b2)
    return feed_forward_packed(plan, x, *packed)


if __name__ == "__main__":
    # Shapes consistent with TransformerAE defaults:
    #   d_model=100, d_ff=100, max_seq_len=9 -> x: (batch, 9, 100)
    # (At this tiny size a plain-XLA dense path would be faster end-to-end;
    #  we still run the Pallas kernel here to exercise it.)
    batch, seq, d_model, d_ff = 2, 9, 100, 100

    key = jax.random.PRNGKey(0)
    kx, kw1, kb1, kw2, kb2 = jax.random.split(key, 5)

    x = jax.random.normal(kx, (batch, seq, d_model), dtype=jnp.float32)

    # nn.Linear-style init (uniform in +-1/sqrt(fan_in)), deterministic.
    lim1 = 1.0 / jnp.sqrt(d_model)
    lim2 = 1.0 / jnp.sqrt(d_ff)
    w1 = jax.random.uniform(kw1, (d_ff, d_model), minval=-lim1, maxval=lim1)
    b1 = jax.random.uniform(kb1, (d_ff,), minval=-lim1, maxval=lim1)
    w2 = jax.random.uniform(kw2, (d_model, d_ff), minval=-lim2, maxval=lim2)
    b2 = jax.random.uniform(kb2, (d_model,), minval=-lim2, maxval=lim2)

    # One-time weight prep, hoisted out of the per-call path.
    plan = plan_ffn(d_model, d_ff)
    w1_t, b1_r, w2_t, b2_r = pack_ffn_params(plan, w1, b1, w2, b2)
    fwd = jax.jit(functools.partial(feed_forward_packed, plan))

    out = jax.block_until_ready(fwd(x, w1_t, b1_r, w2_t, b2_r))

    # Reference check in plain JAX (eval-mode dropout = identity);
    # tolerance loosened for the bf16 MXU compute path (f32 accumulation).
    ref = jnp.maximum(x @ w1.T + b1, 0.0) @ w2.T + b2
    assert out.shape == x.shape
    assert jnp.allclose(out, ref, atol=5e-2, rtol=5e-2), (
        float(jnp.max(jnp.abs(out - ref))))

    print("KERNEL_OK")
</pallas_src>

<mosaic_0001>
module attributes {stable_mosaic.version = 11 : i64} {
  func.func @_ffn_kernel_resident(%arg0: i32, %arg1: i32, %arg2: i32, %arg3: memref<16x128xbf16, #tpu.memory_space<vmem>>, %arg4: memref<128x128xbf16, #tpu.memory_space<vmem>>, %arg5: memref<1x128xf32, #tpu.memory_space<vmem>>, %arg6: memref<128x128xbf16, #tpu.memory_space<vmem>>, %arg7: memref<1x128xf32, #tpu.memory_space<vmem>>, %arg8: memref<16x128xf32, #tpu.memory_space<vmem>>) attributes {dimension_semantics = [#tpu.dimension_semantics<parallel>, #tpu.dimension_semantics<parallel>, #tpu.dimension_semantics<arbitrary>], iteration_bounds = array<i64: 2, 1, 1>, scalar_prefetch = 0 : i64, scratch_operands = 0 : i64, tpu.core_type = #tpu.core_type<tc>, window_params = [{transform_indices = @transform_0, window_bounds = array<i64: 16, 128>}, {transform_indices = @transform_1, window_bounds = array<i64: 128, 128>}, {transform_indices = @transform_2, window_bounds = array<i64: 1, 128>}, {transform_indices = @transform_3, window_bounds = array<i64: 128, 128>}, {transform_indices = @transform_4, window_bounds = array<i64: 1, 128>}, {transform_indices = @transform_5, window_bounds = array<i64: 16, 128>}]} {
    %c0 = arith.constant 0 : index
    %c0_0 = arith.constant 0 : index
    %0 = vector.load %arg3[%c0, %c0_0] : memref<16x128xbf16, #tpu.memory_space<vmem>>, vector<16x128xbf16>
    %c0_1 = arith.constant 0 : index
    %c0_2 = arith.constant 0 : index
    %1 = vector.load %arg4[%c0_1, %c0_2] : memref<128x128xbf16, #tpu.memory_space<vmem>>, vector<128x128xbf16>
    %cst = arith.constant dense<0.000000e+00> : vector<16x128xf32>
    %2 = tpu.matmul %0, %1, %cst {dimension_numbers = #tpu.dot_dimension_numbers<[1], [0], [0], [1], [0, 0, 1, 1], [], []>} : vector<16x128xbf16>, vector<128x128xbf16>, vector<16x128xf32> -> vector<16x128xf32>
    %c0_3 = arith.constant 0 : index
    %c0_4 = arith.constant 0 : index
    %3 = vector.load %arg5[%c0_3, %c0_4] : memref<1x128xf32, #tpu.memory_space<vmem>>, vector<1x128xf32>
    %4 = vector.broadcast %3 : vector<1x128xf32> to vector<16x128xf32>
    %5 = arith.addf %2, %4 : vector<16x128xf32>
    %cst_5 = arith.constant 0.000000e+00 : f32
    %6 = vector.broadcast %cst_5 : f32 to vector<16x128xf32>
    %7 = arith.maximumf %5, %6 : vector<16x128xf32>
    %8 = arith.truncf %7 : vector<16x128xf32> to vector<16x128xbf16>
    %c0_6 = arith.constant 0 : index
    %c0_7 = arith.constant 0 : index
    %9 = vector.load %arg6[%c0_6, %c0_7] : memref<128x128xbf16, #tpu.memory_space<vmem>>, vector<128x128xbf16>
    %cst_8 = arith.constant dense<0.000000e+00> : vector<16x128xf32>
    %10 = tpu.matmul %8, %9, %cst_8 {dimension_numbers = #tpu.dot_dimension_numbers<[1], [0], [0], [1], [0, 0, 1, 1], [], []>} : vector<16x128xbf16>, vector<128x128xbf16>, vector<16x128xf32> -> vector<16x128xf32>
    %c0_9 = arith.constant 0 : index
    %c0_10 = arith.constant 0 : index
    %11 = vector.load %arg7[%c0_9, %c0_10] : memref<1x128xf32, #tpu.memory_space<vmem>>, vector<1x128xf32>
    %12 = vector.broadcast %11 : vector<1x128xf32> to vector<16x128xf32>
    %13 = arith.addf %10, %12 : vector<16x128xf32>
    %c0_11 = arith.constant 0 : index
    %c0_12 = arith.constant 0 : index
    %14 = vector.load %arg8[%c0_11, %c0_12] : memref<16x128xf32, #tpu.memory_space<vmem>>, vector<16x128xf32>
    tpu.vector_store %arg8[%c0_11, %c0_12], %13 {strides = array<i32>} : memref<16x128xf32, #tpu.memory_space<vmem>>, vector<16x128xf32>,
    return
  }
  func.func @transform_0(%arg0: i32, %arg1: i32, %arg2: i32) -> (i32, i32) {
    %c0_i32 = arith.constant 0 : i32
    %c0_i32_0 = arith.constant 0 : i32
    return %arg0, %c0_i32 : i32, i32
  }
  func.func @transform_1(%arg0: i32, %arg1: i32, %arg2: i32) -> (i32, i32) {
    %c0_i32 = arith.constant 0 : i32
    %c0_i32_0 = arith.constant 0 : i32
    return %c0_i32, %arg2 : i32, i32
  }
  func.func @transform_2(%arg0: i32, %arg1: i32, %arg2: i32) -> (i32, i32) {
    %c0_i32 = arith.constant 0 : i32
    %c0_i32_0 = arith.constant 0 : i32
    return %c0_i32, %arg2 : i32, i32
  }
  func.func @transform_3(%arg0: i32, %arg1: i32, %arg2: i32) -> (i32, i32) {
    %c0_i32 = arith.constant 0 : i32
    return %arg2, %arg1 : i32, i32
  }
  func.func @transform_4(%arg0: i32, %arg1: i32, %arg2: i32) -> (i32, i32) {
    %c0_i32 = arith.constant 0 : i32
    %c0_i32_0 = arith.constant 0 : i32
    return %c0_i32, %arg1 : i32, i32
  }
  func.func @transform_5(%arg0: i32, %arg1: i32, %arg2: i32) -> (i32, i32) {
    %c0_i32 = arith.constant 0 : i32
    return %arg0, %arg1 : i32, i32
  }
}

</mosaic_0001>

<bundles_post_ra>
// kernel: feed_forward_packed.1
= control target key start
LH: loop header
LB: loop body
LE: loop exit
PB: predicated region body
PF: predicated region fallthrough
CT: control target
= control target key end

     0   :  { %10 = vsyncpa [#allocation3], 0  ;;  %s938_s18 = smov 0   ;;  %s940_s19 = smov 0   ;;  %s1050_s0 = inlined_call_operand.vmem [shape: bf16[32,128], index: 0, kind: input, shape index: {}]   ;;  %s1051_s1 = inlined_call_operand.vmem [shape: bf16[128,128], index: 1, kind: input, shape index: {}]   ;;  %s1052_s2 = inlined_call_operand.vmem [shape: f32[1,128], index: 2, kind: input, shape index: {}]   ;;  %s1053_s3 = inlined_call_operand.hbm [shape: bf16[128,128], index: 3, kind: input, shape index: {}]   ;;  %s1054_s4 = inlined_call_operand.vmem [shape: f32[1,128], index: 4, kind: input, shape index: {}]   ;;  %s1055_s5 = inlined_call_operand.vmem [shape: f32[32,128], index: 5, kind: output, shape index: {}]  }
   0x1   :  { %s942_s20 = smov 0  }
   0x2 LB: > { %s698_s21 = sadd.s32 4294967295, %s901_s20   ;;  %s35_s22 = sadd.s32 1, %s897_s19  ;;  %s901_s20 = sphi %s942_s20, %s16_s20   ;;  %s897_s19 = sphi %s940_s19, %s1065_s19   ;;  %s893_s18 = sphi %s938_s18, %s1064_s18  }
   0x3   : > { %p37_p0 = scmp.ge.s32.totalorder %s35_s22, 2  ;;  %p700_p1 = scmp.ge.s32.totalorder %s901_s20, 1 }
   0x4   : > { %p200_p2 = scmp.lt.s32.totalorder %s901_s20, 3  ;;  %p963_p4 = scmp.eq.s32.totalorder %s698_s21, 0 }
   0x5   : > { %s1067_s22 = smov (%p37_p0, %s35_s22), 0  ;;  %s903_s25 = smov [#allocation2]  }
   0x6   : > { %p959_p3 = pnand %p700_p1, %p200_p2  ;;  %s229_s26 = sshll.u32 %s903_s25, 4  ;;  %s230_s26 = int_to_ptr.vmem [resolvable:$true] %s229_s26 }
   0x7   : > { %s1060_s24 = scalar_select %p963_p4, 1, 0 }
   0x8   : > { %s1059_s23 = scalar_select %p959_p3, 1, 0 }
   0x9   : > { %p795_p5 = pneg %p959_p3  ;;  %s847_s30 = scalar_lea.hbm %s1053_s3, 1024 }
   0xa   : > { %p848_p7 = scmp.ne.s32.totalorder %s1053_s3, %s847_s30  ;;  %p854_p11 = scmp.lt.u32.totalorder %s847_s30, %s1053_s3 }
   0xb   : > { %p971_p6 = pnand %p963_p4, %p795_p5 }
   0xd   : > { %p849_p8 = pneg %p971_p6 }
   0xf   : > { %p850_p9 = pnand %p849_p8, %p848_p7 }
  0x11   : > { %p851_p10 = pneg %p850_p9 }
  0x13   : > { %p856_p12 = pnand %p854_p11, %p851_p10 }
  0x15   : > { %859 = shalt.err (!%p856_p12)
}
  0x16   : > { %s860_s10 = scalar_lea.vmem %s230_s26, 1024  ;;  %p868_p2 = scmp.lt.s32.totalorder %s230_s26, %s230_s26 }
  0x17   : > { %p861_p13 = scmp.ne.s32.totalorder %s230_s26, %s860_s10  ;;  %p869_p5 = scmp.lt.s32.totalorder %s860_s10, %s860_s10 }
  0x19   : > { %p863_p0 = pnand %p861_p13, %p849_p8  ;;  %p870_p4 = por %p869_p5, %p868_p2 }
  0x1b   : > { %p864_p1 = pneg %p863_p0 }
  0x1d   : > { %p871_p3 = pnand %p870_p4, %p864_p1 }
  0x1f   : > { %874 = shalt.err (!%p871_p3)
}
  0x20   : > { %s904_s11 = smov 64   ;;  %s905_s12 = smov 4  }
  0x21   : > { %798 = dma.hbm_to_vmem [thread:$0]  (!%p971_p6), %s1053_s3, 1024, %s230_s26, [#allocation3], %s904_s11, %s904_s11, %s905_s12  }
  0x22   : > { %p1062_p7 = scmp.ne.s32.totalorder %s1059_s23, 0 }
  0x23   : > { %p1063_p9 = scmp.ne.s32.totalorder (!%p1062_p7), %s1060_s24, 0 }
  0x24   : > { %260 = sbr.rel (%p1062_p7) target bundleno = 515 (0x203), region = 40 }
  0x2b   : > { %888 = dma.done.wait (%p1063_p9), [#allocation3], 1024  }
  0x2c   : > { %890 = vsyncadd (%p1063_p9), [#allocation3], 4294966272  ;;  %s708_s15 = sshll.u32 %s893_s18, 1  ;;  %v906_v0 = vmov 0.0   ;;  %vm907_vm0 = vmmov 0   ;;  %v830_v1 = vld [vmem:[%s1051_s1] sm:$0xff]  }
  0x2d   : > { %751 = vmatprep.subr.bf16.mxu0 %v906_v0  ;;  %767 = vmatprep.mubr.msk.bf16.mxu0 %vm907_vm0, %v906_v0  ;;  %p302_p3 = scmp.lt.s32.totalorder %s708_s15, 3  ;;  %v831_v2 = vld [vmem:[%s1051_s1 + $0x8] sm:$0xff]   ;;  %v832_v3 = vld [vmem:[%s1051_s1 + $0x10] sm:$0xff]   ;;  %v839_v4 = vld [vmem:[#allocation2] sm:$0xff]  }
  0x2e   : > { %771 = vmatprep.subr.bf16.mxu1 %v906_v0  ;;  %787 = vmatprep.mubr.msk.bf16.mxu1 %vm907_vm0, %v906_v0  ;;  %v833_v5 = vld [vmem:[%s1051_s1 + $0x18] sm:$0xff]   ;;  %v840_v6 = vld [vmem:[#allocation2 + $0x8] sm:$0xff]   ;;  %v834_v7 = vld [vmem:[%s1051_s1 + $0x20] sm:$0xff]  }
  0x2f   : > { %s1069_s15 = smov (!%p302_p3, %s708_s15), 3  ;;  %752 = vmatpush3.bf16.msra.mxu0 %v830_v1  ;;  %772 = vmatpush3.bf16.msra.mxu1 %v839_v4  ;;  %v841_v8 = vld [vmem:[#allocation2 + $0x10] sm:$0xff]   ;;  %v835_v9 = vld [vmem:[%s1051_s1 + $0x28] sm:$0xff]   ;;  %v842_v10 = vld [vmem:[#allocation2 + $0x18] sm:$0xff]  }
  0x30   : > { %753 = vmatprep.subr.bf16.mxu0 %v906_v0  ;;  %s709_s18 = sshll.u32 %s1069_s15, 2  ;;  %773 = vmatprep.subr.bf16.mxu1 %v906_v0  ;;  %v836_v11 = vld [vmem:[%s1051_s1 + $0x30] sm:$0xff]   ;;  %v843_v12 = vld [vmem:[#allocation2 + $0x20] sm:$0xff]   ;;  %v837_v13 = vld [vmem:[%s1051_s1 + $0x38] sm:$0xff]   ;;  %s711_s17 = sshll.u32 %s1069_s15, 3 }
  0x31   : > { %s1013_s28 = scalar_lea.vmem %s1050_s0, %s709_s18  ;;  %v844_v14 = vld [vmem:[#allocation2 + $0x28] sm:$0xff]   ;;  %v845_v16 = vld [vmem:[#allocation2 + $0x30] sm:$0xff]   ;;  %v846_v17 = vld [vmem:[#allocation2 + $0x38] sm:$0xff]   ;;  %s325_s25 = scalar_lea.vmem %s1055_s5, %s711_s17 }
  0x32   : > { %v838_v15 = vld [vmem:[%s1013_s28] sm:$0xff]  }
  0x33   : > { %754 = vmatpush3.bf16.msra.mxu0 %v831_v2  ;;  %774 = vmatpush3.bf16.msra.mxu1 %v840_v6  ;;  %v712_v18 = vld [vmem:[%s1052_s2] ss:$0 sm:$0xff] }
  0x34   : > { %755 = vmatprep.subr.bf16.mxu0 %v906_v0  ;;  %775 = vmatprep.subr.bf16.mxu1 %v906_v0  ;;  %v722_v28 = vld [vmem:[%s1054_s4] ss:$0 sm:$0xff] }
  0x37   : > { %756 = vmatpush3.bf16.msra.mxu0 %v832_v3  ;;  %776 = vmatpush3.bf16.msra.mxu1 %v841_v8 }
  0x38   : > { %757 = vmatprep.subr.bf16.mxu0 %v906_v0  ;;  %777 = vmatprep.subr.bf16.mxu1 %v906_v0 }
  0x3b   : > { %758 = vmatpush3.bf16.msra.mxu0 %v833_v5  ;;  %778 = vmatpush3.bf16.msra.mxu1 %v842_v10 }
  0x3c   : > { %759 = vmatprep.subr.bf16.mxu0 %v906_v0  ;;  %779 = vmatprep.subr.bf16.mxu1 %v906_v0 }
  0x3f   : > { %760 = vmatpush3.bf16.msra.mxu0 %v834_v7  ;;  %780 = vmatpush3.bf16.msra.mxu1 %v843_v12 }
  0x40   : > { %761 = vmatprep.subr.bf16.mxu0 %v906_v0  ;;  %781 = vmatprep.subr.bf16.mxu1 %v906_v0 }
  0x43   : > { %762 = vmatpush3.bf16.msra.mxu0 %v835_v9  ;;  %782 = vmatpush3.bf16.msra.mxu1 %v844_v14 }
  0x44   : > { %763 = vmatprep.subr.bf16.mxu0 %v906_v0  ;;  %783 = vmatprep.subr.bf16.mxu1 %v906_v0 }
  0x47   : > { %764 = vmatpush3.bf16.msra.mxu0 %v836_v11  ;;  %784 = vmatpush3.bf16.msra.mxu1 %v845_v16 }
  0x48   : > { %765 = vmatprep.subr.bf16.mxu0 %v906_v0  ;;  %785 = vmatprep.subr.bf16.mxu1 %v906_v0 }
  0x4b   : > { %766 = vmatpush3.bf16.msra.mxu0 %v837_v13  ;;  %786 = vmatpush3.bf16.msra.mxu1 %v846_v17 }
  0x4e   : > { %768 = vmatmul.mubr.bf16.vlgmr.msra.gmra.mrb[0].mxu0 %v838_v15 }
 0x121   : > { %v441_v19 = vpop.f32.mrb[0].mxu0 }
 0x122   : > { %v442_v20 = vadd.f32 %v712_v18, %v441_v19  ;;  %v769_v21 = vpop.f32.mrb[1].mxu0 }
 0x123   : > { %v444_v22 = vpop.f32.mrb[2].mxu0 }
 0x124   : > { %v445_v23 = vadd.f32 %v712_v18, %v444_v22  ;;  %v770_v24 = vpop.f32.mrb[3].mxu0  ;;  %v448_v25 = vmax.f32 %v442_v20, 0.0 }
 0x126   : > { %v449_v26 = vmax.f32 %v445_v23, 0.0 }
 0x128   : > { %v450_v27 = vpack.c.bf16 %v449_v26, %v448_v25 }
 0x12a   : > { %788 = vmatmul.mubr.bf16.vlgmr.msra.gmra.mrb[0].mxu1 %v450_v27 }
 0x1fd   : > { %v556_v29 = vpop.f32.mrb[0].mxu1 }
 0x1fe   : > { %v557_v30 = vadd.f32 %v722_v28, %v556_v29  ;;  %v789_v31 = vpop.f32.mrb[1].mxu1 }
 0x1ff   : > { %v559_v32 = vpop.f32.mrb[2].mxu1 }
 0x200   : > { %563 = vst [vmem:[%s325_s25] sm:$0xff] %v557_v30  ;;  %v560_v33 = vadd.f32 %v722_v28, %v559_v32  ;;  %v790_v34 = vpop.f32.mrb[3].mxu1 }
 0x202   : > { %564 = vst [vmem:[%s325_s25 + $0x8] sm:$0xff] %v560_v33 }
 0x203 PF: > { %s16_s20 = sadd.s32 1, %s901_s20   ;;  %s1064_s18 = smov %s897_s19 }
 0x204   : > { %p13_p4 = scmp.ge.s32.totalorder %s16_s20, 4   ;;  %s1065_s19 = smov %s1067_s22 }
 0x206   :  { %15 = sbr.rel (!%p13_p4) target bundleno = 2 (0x2), region = 85 }
 0x20d   :  { %593 = vsyncpa [#allocation3], 1 }
 0x20e   :  { %595 = vsyncpa [#allocation3 + $0x1], 1 }

</bundles_post_ra>
